<compile_context>
chip_gen: v6e
topology: v6e:2x2x1
jax: 0.10.0
libtpu: 0.0.40
codegen_flags: <defaults>
</compile_context>

<pallas_src>
import numpy as np

import jax
import jax.numpy as jnp
from jax.experimental import pallas as pl
from jax.experimental.pallas import tpu as pltpu

C_IN, C_OUT = 4, 20
K = 3
STRIDE = 7
DIL = 2
PAD = 2
OUT_PAD = 7

C_PAD = 64  # C_out padded so that batch * C_PAD = 128 lanes (lane-dense output rows)


def _kernel(xe_ref, w_ref, s_ref, b_ref, o_ref):
    # Matmul 1: per-(input position, tap) 128-lane contribution rows.
    res = jnp.dot(xe_ref[...], w_ref[...], preferred_element_type=jnp.float32)   # (36, 128)
    # Matmul 2: static scatter of tap rows onto output positions (sums overlaps).
    slab = jnp.dot(s_ref[...], res, preferred_element_type=jnp.float32)          # (R_pad, 128)
    # Single bias broadcast-add + one contiguous unmasked slab store.
    o_ref[...] = (slab + b_ref[...]).astype(o_ref.dtype)


def prepare_params(weight, bias, batch):
    """One-time weight preprocessing (hoisted out of the per-call jit path).

    weight: (C_in, C_out, kH, kW); bias: (C_out,).
    Returns:
      w_stack : (K*K*batch*C_in, batch*C_PAD) block-diagonal tap-stacked weights
      bias_row: (1, batch*C_PAD) bias replicated per batch lane block
    """
    assert batch * C_PAD == 128, "lane packing requires batch * 64 == 128"
    w = np.asarray(weight, dtype=np.float32)
    b = np.asarray(bias, dtype=np.float32)

    # w_t[t, cin, co] = weight[cin, co, kh, kw], t = kh*K + kw
    w_t = np.transpose(w, (2, 3, 0, 1)).reshape(K * K, C_IN, C_OUT)

    # w_stack[t*batch*C_in + n*C_in + cin, n*C_PAD + co] = w_t[t, cin, co]
    w_stack = np.zeros((K * K, batch, C_IN, batch, C_PAD), np.float32)
    for n in range(batch):
        w_stack[:, n, :, n, :C_OUT] = w_t
    w_stack = w_stack.reshape(K * K * batch * C_IN, batch * C_PAD)

    bias_row = np.tile(np.pad(b, (0, C_PAD - C_OUT)), batch).reshape(1, batch * C_PAD)
    return jnp.asarray(w_stack), jnp.asarray(bias_row)


@jax.jit
def conv_transpose2d(x_nchw, w_stack, bias_row):
    """x_nchw: (N, C_in, H, W); w_stack/bias_row from prepare_params."""
    batch, c_in, H_in, W_in = x_nchw.shape
    assert c_in == C_IN and batch * C_PAD == 128

    H_out = (H_in - 1) * STRIDE - 2 * PAD + DIL * (K - 1) + OUT_PAD + 1
    W_out = (W_in - 1) * STRIDE - 2 * PAD + DIL * (K - 1) + OUT_PAD + 1
    n_taps = K * K
    n_pos = H_in * W_in
    n_rows = H_out * W_out
    n_rows_pad = ((n_rows + 7) // 8) * 8   # pad to sublane multiple -> unmasked stores

    # x2[ih*W_in+iw, n*C_in+cin] = x[n, cin, ih, iw]
    x2 = jnp.transpose(x_nchw, (2, 3, 0, 1)).reshape(n_pos, batch * C_IN)

    # Tap-expanded LHS (no contraction in this einsum -> exact elementwise mul):
    #   x_exp[i*n_taps + t, u*(batch*C_in) + p] = x2[i, p] * (t == u)
    eye_t = np.eye(n_taps, dtype=np.float32)
    x_exp = jnp.einsum('tu,ip->itup', eye_t, x2).reshape(
        n_pos * n_taps, n_taps * batch * C_IN)                       # (36, 72)

    # Static scatter matrix (trace-time numpy constant): S[r, i*n_taps+t] = 1
    # when tap t of input position i lands on output row r = oh*W_out + ow.
    s_np = np.zeros((n_rows_pad, n_pos * n_taps), np.float32)
    for ih in range(H_in):
        for kh in range(K):
            oh = ih * STRIDE - PAD + kh * DIL
            if not 0 <= oh < H_out:
                continue
            for iw in range(W_in):
                for kw in range(K):
                    ow = iw * STRIDE - PAD + kw * DIL
                    if not 0 <= ow < W_out:
                        continue
                    r = oh * W_out + ow
                    s_np[r, (ih * W_in + iw) * n_taps + kh * K + kw] += 1.0
    s_mat = jnp.asarray(s_np)                                        # (232, 36)

    out_slab = pl.pallas_call(
        _kernel,
        out_shape=jax.ShapeDtypeStruct((n_rows_pad, batch * C_PAD), x_nchw.dtype),
        in_specs=[
            pl.BlockSpec(memory_space=pltpu.MemorySpace.VMEM),  # x_exp
            pl.BlockSpec(memory_space=pltpu.MemorySpace.VMEM),  # w_stack
            pl.BlockSpec(memory_space=pltpu.MemorySpace.VMEM),  # scatter matrix
            pl.BlockSpec(memory_space=pltpu.MemorySpace.VMEM),  # bias row
        ],
        out_specs=pl.BlockSpec(memory_space=pltpu.MemorySpace.VMEM),
    )(x_exp, w_stack, s_mat, bias_row)

    # (n_rows_pad, batch*64) -> (N, C_out, H_out, W_out)
    out = out_slab[:n_rows].reshape(H_out, W_out, batch, C_PAD)[:, :, :, :C_OUT]
    return jnp.transpose(out, (2, 3, 0, 1))


def _reference(x_nchw, weight, bias):
    """Pure-JAX reference via lhs-dilated convolution."""
    w_conv = jnp.transpose(weight, (1, 0, 2, 3))[:, :, ::-1, ::-1]  # (C_out, C_in, kH, kW)
    pad_lo = DIL * (K - 1) - PAD
    pad_hi = DIL * (K - 1) - PAD + OUT_PAD
    out = jax.lax.conv_general_dilated(
        x_nchw,
        w_conv,
        window_strides=(1, 1),
        padding=[(pad_lo, pad_hi), (pad_lo, pad_hi)],
        lhs_dilation=(STRIDE, STRIDE),
        rhs_dilation=(DIL, DIL),
        dimension_numbers=("NCHW", "OIHW", "NCHW"),
        precision=jax.lax.Precision.HIGHEST,
    )
    return out + bias.reshape(1, C_OUT, 1, 1)


if __name__ == "__main__":
    key = jax.random.PRNGKey(0)
    kx, kw, kb = jax.random.split(key, 3)

    # Input matching the PyTorch script: torch.randn(2, 4, 2, 2)
    x1 = jax.random.normal(kx, (2, 4, 2, 2), dtype=jnp.float32)

    # Deterministic parameter init (PyTorch-style uniform bound).
    bound = 1.0 / (C_IN * K * K) ** 0.5
    weight = jax.random.uniform(
        kw, (C_IN, C_OUT, K, K), minval=-bound, maxval=bound, dtype=jnp.float32
    )
    bias = jax.random.uniform(
        kb, (C_OUT,), minval=-bound, maxval=bound, dtype=jnp.float32
    )

    # One-time weight preprocessing (amortized across calls).
    w_stack, bias_row = prepare_params(weight, bias, batch=x1.shape[0])

    out = conv_transpose2d(x1, w_stack, bias_row)
    out = jax.block_until_ready(out)

    assert out.shape == (2, 20, 15, 15), out.shape

    ref = _reference(x1, weight, bias)
    assert jnp.allclose(out, ref, atol=1e-4, rtol=1e-4), "mismatch vs reference"

    print("KERNEL_OK")
</pallas_src>

<mosaic_0001>
module attributes {stable_mosaic.version = 11 : i64} {
  func.func @_kernel(%arg0: memref<36x72xf32, #tpu.memory_space<vmem>>, %arg1: memref<72x128xf32, #tpu.memory_space<vmem>>, %arg2: memref<232x36xf32, #tpu.memory_space<vmem>>, %arg3: memref<1x128xf32, #tpu.memory_space<vmem>>, %arg4: memref<232x128xf32, #tpu.memory_space<vmem>>) attributes {dimension_semantics = [], scalar_prefetch = 0 : i64, scratch_operands = 0 : i64, tpu.core_type = #tpu.core_type<tc>} {
    %c0 = arith.constant 0 : index
    %c0_0 = arith.constant 0 : index
    %0 = vector.load %arg0[%c0, %c0_0] : memref<36x72xf32, #tpu.memory_space<vmem>>, vector<36x72xf32>
    %c0_1 = arith.constant 0 : index
    %c0_2 = arith.constant 0 : index
    %1 = vector.load %arg1[%c0_1, %c0_2] : memref<72x128xf32, #tpu.memory_space<vmem>>, vector<72x128xf32>
    %cst = arith.constant dense<0.000000e+00> : vector<36x128xf32>
    %2 = tpu.matmul %0, %1, %cst {dimension_numbers = #tpu.dot_dimension_numbers<[1], [0], [0], [1], [0, 0, 1, 1], [], []>} : vector<36x72xf32>, vector<72x128xf32>, vector<36x128xf32> -> vector<36x128xf32>
    %c0_3 = arith.constant 0 : index
    %c0_4 = arith.constant 0 : index
    %3 = vector.load %arg2[%c0_3, %c0_4] : memref<232x36xf32, #tpu.memory_space<vmem>>, vector<232x36xf32>
    %cst_5 = arith.constant dense<0.000000e+00> : vector<232x128xf32>
    %4 = tpu.matmul %3, %2, %cst_5 {dimension_numbers = #tpu.dot_dimension_numbers<[1], [0], [0], [1], [0, 0, 1, 1], [], []>} : vector<232x36xf32>, vector<36x128xf32>, vector<232x128xf32> -> vector<232x128xf32>
    %c0_6 = arith.constant 0 : index
    %c0_7 = arith.constant 0 : index
    %5 = vector.load %arg3[%c0_6, %c0_7] : memref<1x128xf32, #tpu.memory_space<vmem>>, vector<1x128xf32>
    %6 = vector.broadcast %5 : vector<1x128xf32> to vector<232x128xf32>
    %7 = arith.addf %4, %6 : vector<232x128xf32>
    %c0_8 = arith.constant 0 : index
    %c0_9 = arith.constant 0 : index
    %8 = vector.load %arg4[%c0_8, %c0_9] : memref<232x128xf32, #tpu.memory_space<vmem>>, vector<232x128xf32>
    tpu.vector_store %arg4[%c0_8, %c0_9], %7 {strides = array<i32>} : memref<232x128xf32, #tpu.memory_space<vmem>>, vector<232x128xf32>,
    return
  }
}

</mosaic_0001>

<bundles_post_ra>
// kernel: conv_transpose2d.1
= control target key start
LH: loop header
LB: loop body
LE: loop exit
PB: predicated region body
PF: predicated region fallthrough
CT: control target
= control target key end

     0   :  { %v734_v0 = vmov 0.0   ;;  %vm735_vm0 = vmmov 0   ;;  %vm31_vm1 = vcmask 588800   ;;  %vm261_vm2 = vcmask 1043456   ;;  %s1132_s1 = inlined_call_operand.vmem [shape: f32[72,128], index: 1, kind: input, shape index: {}]   ;;  %s1133_s0 = inlined_call_operand.vmem [shape: f32[36,72], index: 0, kind: input, shape index: {}]   ;;  %s1134_s2 = inlined_call_operand.vmem [shape: f32[232,36], index: 2, kind: input, shape index: {}]   ;;  %s1135_s3 = inlined_call_operand.vmem [shape: f32[1,128], index: 3, kind: input, shape index: {}]   ;;  %s1136_s4 = inlined_call_operand.vmem [shape: f32[232,128], index: 4, kind: output, shape index: {}]  }
   0x1   :  { %592 = vmatprep.subr.mxu0 %v734_v0  ;;  %v30_v1 = vld [vmem:[%s1132_s1 + $0x40] sm:$0xff]  ;;  %v29_v2 = vld [vmem:[%s1132_s1 + $0x38] sm:$0xff]  ;;  %610 = vmatprep.mubr.msk.f32.mxu0 %vm735_vm0, %v734_v0  ;;  %v28_v3 = vld [vmem:[%s1132_s1 + $0x30] sm:$0xff]  ;;  %vm173_vm3 = vcmask 293888  }
   0x2   :  { %593 = vmatpush3.msra.mxu0 %v30_v1  ;;  %722 = vmatprep.subr.mxu1 %v734_v0  ;;  %v27_v4 = vld [vmem:[%s1132_s1 + $0x28] sm:$0xff]  ;;  %v26_v5 = vld [vmem:[%s1132_s1 + $0x20] sm:$0xff]  ;;  %v25_v6 = vld [vmem:[%s1132_s1 + $0x18] sm:$0xff] }
   0x3   :  { %594 = vmatprep.subr.mxu0 %v734_v0  ;;  %668 = vmatprep.mubr.msk.f32.mxu1 %vm735_vm0, %v734_v0  ;;  %v24_v7 = vld [vmem:[%s1132_s1 + $0x10] sm:$0xff]  ;;  %v23_v8 = vld [vmem:[%s1132_s1 + $0x8] sm:$0xff]  ;;  %v22_v9 = vld [vmem:[%s1132_s1] sm:$0xff] }
   0x4   :  { %595 = vmatpush3.msra.mxu0 %v29_v2  ;;  %v17_v10 = vld [vmem:[%s1133_s0] sm:$0xff]  ;;  %v18_v11 = vld [vmem:[%s1133_s0 + $0x8] sm:$0xff]  ;;  %v19_v12 = vld [vmem:[%s1133_s0 + $0x10] sm:$0xff] }
   0x5   :  { %596 = vmatprep.subr.mxu0 %v734_v0  ;;  %v20_v13 = vld [vmem:[%s1133_s0 + $0x18] sm:$0xff]  ;;  %v21_v14 = vld [vmem:[%s1133_s0 + $0x20] sm:$0xf]  ;;  %v138_v28 = vld [vmem:[%s1134_s2 + $0x8] sm:$0xff] }
   0x6   :  { %597 = vmatpush3.msra.mxu0 %v28_v3  ;;  %v148_v25 = vld [vmem:[%s1134_s2 + $0x58] sm:$0xff]  ;;  %v137_v26 = vld [vmem:[%s1134_s2] sm:$0xff]  ;;  %v150_v29 = vld [vmem:[%s1134_s2 + $0x68] sm:$0xff] }
   0x7   :  { %598 = vmatprep.subr.mxu0 %v734_v0  ;;  %v149_v27 = vld [vmem:[%s1134_s2 + $0x60] sm:$0xff]  ;;  %v139_v30 = vld [vmem:[%s1134_s2 + $0x10] sm:$0xff]  ;;  %v140_v32 = vld [vmem:[%s1134_s2 + $0x18] sm:$0xff] }
   0x8   :  { %599 = vmatpush3.msra.mxu0 %v27_v4  ;;  %v151_v31 = vld [vmem:[%s1134_s2 + $0x70] sm:$0xff]  ;;  %v152_v33 = vld [vmem:[%s1134_s2 + $0x78] sm:$0xff]  ;;  %v141_v34 = vld [vmem:[%s1134_s2 + $0x20] sm:$0xff] }
   0x9   :  { %600 = vmatprep.subr.mxu0 %v734_v0  ;;  %v153_v35 = vld [vmem:[%s1134_s2 + $0x80] sm:$0xff]  ;;  %v142_v36 = vld [vmem:[%s1134_s2 + $0x28] sm:$0xff]  ;;  %v143_v38 = vld [vmem:[%s1134_s2 + $0x30] sm:$0xff] }
   0xa   :  { %601 = vmatpush3.msra.mxu0 %v26_v5  ;;  %v154_v37 = vld [vmem:[%s1134_s2 + $0x88] sm:$0xff]  ;;  %v155_v39 = vld [vmem:[%s1134_s2 + $0x90] sm:$0xff]  ;;  %v144_v40 = vld [vmem:[%s1134_s2 + $0x38] sm:$0xff] }
   0xb   :  { %602 = vmatprep.subr.mxu0 %v734_v0  ;;  %v156_v41 = vld [vmem:[%s1134_s2 + $0x98] sm:$0xff]  ;;  %v145_v42 = vld [vmem:[%s1134_s2 + $0x40] sm:$0xff]  ;;  %v146_v44 = vld [vmem:[%s1134_s2 + $0x48] sm:$0xff] }
   0xc   :  { %603 = vmatpush3.msra.mxu0 %v25_v6  ;;  %v157_v43 = vld [vmem:[%s1134_s2 + $0xa0] sm:$0xff]  ;;  %v158_v45 = vld [vmem:[%s1134_s2 + $0xa8] sm:$0xff]  ;;  %v147_v46 = vld [vmem:[%s1134_s2 + $0x50] sm:$0xff] }
   0xd   :  { %604 = vmatprep.subr.mxu0 %v734_v0  ;;  %v159_v47 = vld [vmem:[%s1134_s2 + $0xb0] sm:$0xff]  ;;  %v160_v48 = vld [vmem:[%s1134_s2 + $0xb8] sm:$0xff]  ;;  %v161_v49 = vld [vmem:[%s1134_s2 + $0xc0] sm:$0xff] }
   0xe   :  { %605 = vmatpush3.msra.mxu0 %v24_v7  ;;  %v162_v50 = vld [vmem:[%s1134_s2 + $0xc8] sm:$0xff]  ;;  %v163_v51 = vld [vmem:[%s1134_s2 + $0xd0] sm:$0xff]  ;;  %v164_v52 = vld [vmem:[%s1134_s2 + $0xd8] sm:$0xff] }
   0xf   :  { %606 = vmatprep.subr.mxu0 %v734_v0  ;;  %v165_v53 = vld [vmem:[%s1134_s2 + $0xe0] sm:$0xff] }
  0x10   :  { %607 = vmatpush3.msra.mxu0 %v23_v8  ;;  %v1014_v54 = vld [vmem:[%s1135_s3] ss:$0 sm:$0xff] }
  0x11   :  { %608 = vmatprep.subr.mxu0 %v734_v0 }
  0x12   :  { %609 = vmatpush3.msra.mxu0 %v22_v9 }
  0x13   :  { %611 = vmatmul.mubr.msk.f32.vlgmr.msra.gmra.mxu0 %vm31_vm1, %v17_v10  ;;  %625 = vmatprep.subr.mxu0 %v734_v0 }
  0x14   :  { %613 = vmatprep.mubr.msk.f32.mxu0 %vm735_vm0, %v734_v0 }
  0x17   :  { %614 = vmatmul.mubr.msk.f32.gmra.mxu0 %vm31_vm1, %v18_v11 }
  0x18   :  { %616 = vmatprep.mubr.msk.f32.mxu0 %vm735_vm0, %v734_v0 }
  0x1b   :  { %617 = vmatmul.mubr.msk.f32.gmra.mxu0 %vm31_vm1, %v19_v12 }
  0x1c   :  { %619 = vmatprep.mubr.msk.f32.mxu0 %vm735_vm0, %v734_v0 }
  0x1f   :  { %620 = vmatmul.mubr.msk.f32.gmra.mxu0 %vm31_vm1, %v20_v13 }
  0x20   :  { %622 = vmatprep.mubr.msk.f32.mxu0 %vm735_vm0, %v734_v0 }
  0x23   :  { %623 = vmatmul.mubr.msk.f32.gmra.mxu0 %vm31_vm1, %v21_v14 }
  0x24   :  { %635 = vmatprep.mubr.msk.f32.mxu0 %vm735_vm0, %v734_v0 }
  0xd3   :  { %v113_v15 = vpop.f32.mrf.mxu0 }
  0xd5   :  { %v612_v16 = vpop.f32.mrf.mxu0 }
  0xd7   :  { %v118_v17 = vpop.f32.mrf.mxu0 }
  0xd9   :  { %v615_v18 = vpop.f32.mrf.mxu0 }
  0xdb   :  { %v123_v19 = vpop.f32.mrf.mxu0 }
  0xdd   :  { %v618_v20 = vpop.f32.mrf.mxu0 }
  0xdf   :  { %v128_v21 = vpop.f32.mrf.mxu0 }
  0xe1   :  { %v621_v22 = vpop.f32.mrf.mxu0 }
  0xe3   :  { %v133_v23 = vpop.f32.mrf.mxu0 }
  0xe4   :  { %626 = vmatpush3.msk.msra.mxu0 %vm261_vm2, %v133_v23  ;;  %727 = vmatpush3.msk.msra.mxu1 %vm261_vm2, %v133_v23 }
  0xe5   :  { %v624_v24 = vpop.f32.mrf.mxu0  ;;  %627 = vmatprep.subr.mxu0 %v734_v0  ;;  %723 = vmatprep.subr.mxu1 %v734_v0 }
  0xe6   :  { %628 = vmatpush3.msra.mxu0 %v128_v21  ;;  %728 = vmatpush3.msra.mxu1 %v128_v21 }
  0xe7   :  { %629 = vmatprep.subr.mxu0 %v734_v0  ;;  %724 = vmatprep.subr.mxu1 %v734_v0 }
  0xe8   :  { %630 = vmatpush3.msra.mxu0 %v123_v19  ;;  %729 = vmatpush3.msra.mxu1 %v123_v19 }
  0xe9   :  { %631 = vmatprep.subr.mxu0 %v734_v0  ;;  %725 = vmatprep.subr.mxu1 %v734_v0 }
  0xea   :  { %632 = vmatpush3.msra.mxu0 %v118_v17  ;;  %730 = vmatpush3.msra.mxu1 %v118_v17 }
  0xeb   :  { %633 = vmatprep.subr.mxu0 %v734_v0  ;;  %726 = vmatprep.subr.mxu1 %v734_v0 }
  0xec   :  { %634 = vmatpush3.msra.mxu0 %v113_v15  ;;  %731 = vmatpush3.msra.mxu1 %v113_v15 }
  0xed   :  { %669 = vmatmul.mubr.msk.f32.vlgmr.msra.gmra.mxu1 %vm173_vm3, %v148_v25  ;;  %636 = vmatmul.mubr.msk.f32.vlgmr.msra.gmra.mxu0 %vm173_vm3, %v137_v26 }
  0xee   :  { %671 = vmatprep.mubr.msk.f32.mxu1 %vm735_vm0, %v734_v0  ;;  %638 = vmatprep.mubr.msk.f32.mxu0 %vm735_vm0, %v734_v0 }
  0xf1   :  { %672 = vmatmul.mubr.msk.f32.gmra.mxu1 %vm173_vm3, %v149_v27  ;;  %639 = vmatmul.mubr.msk.f32.gmra.mxu0 %vm173_vm3, %v138_v28 }
  0xf2   :  { %674 = vmatprep.mubr.msk.f32.mxu1 %vm735_vm0, %v734_v0  ;;  %641 = vmatprep.mubr.msk.f32.mxu0 %vm735_vm0, %v734_v0 }
  0xf5   :  { %675 = vmatmul.mubr.msk.f32.gmra.mxu1 %vm173_vm3, %v150_v29  ;;  %642 = vmatmul.mubr.msk.f32.gmra.mxu0 %vm173_vm3, %v139_v30 }
  0xf6   :  { %677 = vmatprep.mubr.msk.f32.mxu1 %vm735_vm0, %v734_v0  ;;  %644 = vmatprep.mubr.msk.f32.mxu0 %vm735_vm0, %v734_v0 }
  0xf9   :  { %678 = vmatmul.mubr.msk.f32.gmra.mxu1 %vm173_vm3, %v151_v31  ;;  %645 = vmatmul.mubr.msk.f32.gmra.mxu0 %vm173_vm3, %v140_v32 }
  0xfa   :  { %680 = vmatprep.mubr.msk.f32.mxu1 %vm735_vm0, %v734_v0  ;;  %647 = vmatprep.mubr.msk.f32.mxu0 %vm735_vm0, %v734_v0 }
  0xfd   :  { %681 = vmatmul.mubr.msk.f32.gmra.mxu1 %vm173_vm3, %v152_v33  ;;  %648 = vmatmul.mubr.msk.f32.gmra.mxu0 %vm173_vm3, %v141_v34 }
  0xfe   :  { %683 = vmatprep.mubr.msk.f32.mxu1 %vm735_vm0, %v734_v0  ;;  %650 = vmatprep.mubr.msk.f32.mxu0 %vm735_vm0, %v734_v0 }
 0x101   :  { %684 = vmatmul.mubr.msk.f32.gmra.mxu1 %vm173_vm3, %v153_v35  ;;  %651 = vmatmul.mubr.msk.f32.gmra.mxu0 %vm173_vm3, %v142_v36 }
 0x102   :  { %686 = vmatprep.mubr.msk.f32.mxu1 %vm735_vm0, %v734_v0  ;;  %653 = vmatprep.mubr.msk.f32.mxu0 %vm735_vm0, %v734_v0 }
 0x105   :  { %687 = vmatmul.mubr.msk.f32.gmra.mxu1 %vm173_vm3, %v154_v37  ;;  %654 = vmatmul.mubr.msk.f32.gmra.mxu0 %vm173_vm3, %v143_v38 }
 0x106   :  { %689 = vmatprep.mubr.msk.f32.mxu1 %vm735_vm0, %v734_v0  ;;  %656 = vmatprep.mubr.msk.f32.mxu0 %vm735_vm0, %v734_v0 }
 0x109   :  { %690 = vmatmul.mubr.msk.f32.gmra.mxu1 %vm173_vm3, %v155_v39  ;;  %657 = vmatmul.mubr.msk.f32.gmra.mxu0 %vm173_vm3, %v144_v40 }
 0x10a   :  { %692 = vmatprep.mubr.msk.f32.mxu1 %vm735_vm0, %v734_v0  ;;  %659 = vmatprep.mubr.msk.f32.mxu0 %vm735_vm0, %v734_v0 }
 0x10d   :  { %693 = vmatmul.mubr.msk.f32.gmra.mxu1 %vm173_vm3, %v156_v41  ;;  %660 = vmatmul.mubr.msk.f32.gmra.mxu0 %vm173_vm3, %v145_v42 }
 0x10e   :  { %695 = vmatprep.mubr.msk.f32.mxu1 %vm735_vm0, %v734_v0  ;;  %662 = vmatprep.mubr.msk.f32.mxu0 %vm735_vm0, %v734_v0 }
 0x111   :  { %696 = vmatmul.mubr.msk.f32.gmra.mxu1 %vm173_vm3, %v157_v43  ;;  %663 = vmatmul.mubr.msk.f32.gmra.mxu0 %vm173_vm3, %v146_v44 }
 0x112   :  { %698 = vmatprep.mubr.msk.f32.mxu1 %vm735_vm0, %v734_v0  ;;  %665 = vmatprep.mubr.msk.f32.mxu0 %vm735_vm0, %v734_v0 }
 0x115   :  { %699 = vmatmul.mubr.msk.f32.gmra.mxu1 %vm173_vm3, %v158_v45  ;;  %666 = vmatmul.mubr.msk.f32.gmra.mxu0 %vm173_vm3, %v147_v46 }
 0x116   :  { %701 = vmatprep.mubr.msk.f32.mxu1 %vm735_vm0, %v734_v0 }
 0x119   :  { %702 = vmatmul.mubr.msk.f32.gmra.mxu1 %vm173_vm3, %v159_v47 }
 0x11a   :  { %704 = vmatprep.mubr.msk.f32.mxu1 %vm735_vm0, %v734_v0 }
 0x11d   :  { %705 = vmatmul.mubr.msk.f32.gmra.mxu1 %vm173_vm3, %v160_v48 }
 0x11e   :  { %707 = vmatprep.mubr.msk.f32.mxu1 %vm735_vm0, %v734_v0 }
 0x121   :  { %708 = vmatmul.mubr.msk.f32.gmra.mxu1 %vm173_vm3, %v161_v49 }
 0x122   :  { %710 = vmatprep.mubr.msk.f32.mxu1 %vm735_vm0, %v734_v0 }
 0x125   :  { %711 = vmatmul.mubr.msk.f32.gmra.mxu1 %vm173_vm3, %v162_v50 }
 0x126   :  { %713 = vmatprep.mubr.msk.f32.mxu1 %vm735_vm0, %v734_v0 }
 0x129   :  { %714 = vmatmul.mubr.msk.f32.gmra.mxu1 %vm173_vm3, %v163_v51 }
 0x12a   :  { %716 = vmatprep.mubr.msk.f32.mxu1 %vm735_vm0, %v734_v0 }
 0x12d   :  { %717 = vmatmul.mubr.msk.f32.gmra.mxu1 %vm173_vm3, %v164_v52 }
 0x12e   :  { %719 = vmatprep.mubr.msk.f32.mxu1 %vm735_vm0, %v734_v0 }
 0x131   :  { %720 = vmatmul.mubr.msk.f32.gmra.mxu1 %vm173_vm3, %v165_v53 }
 0x1ad   :  { %v386_v55 = vpop.f32.mrf.mxu1  ;;  %v331_v56 = vpop.f32.mrf.mxu0 }
 0x1ae   :  { %v387_v57 = vadd.f32 %v1014_v54, %v386_v55  ;;  %v332_v58 = vadd.f32 %v1014_v54, %v331_v56 }
 0x1af   :  { %v670_v59 = vpop.f32.mrf.mxu1  ;;  %v637_v60 = vpop.f32.mrf.mxu0 }
 0x1b0   :  { %486 = vst [vmem:[%s1136_s4 + $0x58] sm:$0xff] %v387_v57  ;;  %475 = vst [vmem:[%s1136_s4] sm:$0xff] %v332_v58 }
 0x1b1   :  { %v391_v61 = vpop.f32.mrf.mxu1  ;;  %v336_v62 = vpop.f32.mrf.mxu0 }
 0x1b2   :  { %v392_v63 = vadd.f32 %v1014_v54, %v391_v61  ;;  %v337_v0 = vadd.f32 %v1014_v54, %v336_v62 }
 0x1b3   :  { %v673_v1 = vpop.f32.mrf.mxu1  ;;  %v640_v2 = vpop.f32.mrf.mxu0 }
 0x1b4   :  { %487 = vst [vmem:[%s1136_s4 + $0x60] sm:$0xff] %v392_v63  ;;  %476 = vst [vmem:[%s1136_s4 + $0x8] sm:$0xff] %v337_v0 }
 0x1b5   :  { %v396_v3 = vpop.f32.mrf.mxu1  ;;  %v341_v4 = vpop.f32.mrf.mxu0 }
 0x1b6   :  { %v397_v5 = vadd.f32 %v1014_v54, %v396_v3  ;;  %v342_v6 = vadd.f32 %v1014_v54, %v341_v4 }
 0x1b7   :  { %v676_v7 = vpop.f32.mrf.mxu1  ;;  %v643_v8 = vpop.f32.mrf.mxu0 }
 0x1b8   :  { %488 = vst [vmem:[%s1136_s4 + $0x68] sm:$0xff] %v397_v5  ;;  %477 = vst [vmem:[%s1136_s4 + $0x10] sm:$0xff] %v342_v6 }
 0x1b9   :  { %v401_v9 = vpop.f32.mrf.mxu1  ;;  %v346_v10 = vpop.f32.mrf.mxu0 }
 0x1ba   :  { %v402_v11 = vadd.f32 %v1014_v54, %v401_v9  ;;  %v347_v12 = vadd.f32 %v1014_v54, %v346_v10 }
 0x1bb   :  { %v679_v13 = vpop.f32.mrf.mxu1  ;;  %v646_v14 = vpop.f32.mrf.mxu0 }
 0x1bc   :  { %489 = vst [vmem:[%s1136_s4 + $0x70] sm:$0xff] %v402_v11  ;;  %478 = vst [vmem:[%s1136_s4 + $0x18] sm:$0xff] %v347_v12 }
 0x1bd   :  { %v406_v15 = vpop.f32.mrf.mxu1  ;;  %v351_v16 = vpop.f32.mrf.mxu0 }
 0x1be   :  { %v407_v17 = vadd.f32 %v1014_v54, %v406_v15  ;;  %v352_v18 = vadd.f32 %v1014_v54, %v351_v16 }
 0x1bf   :  { %v682_v19 = vpop.f32.mrf.mxu1  ;;  %v649_v20 = vpop.f32.mrf.mxu0 }
 0x1c0   :  { %490 = vst [vmem:[%s1136_s4 + $0x78] sm:$0xff] %v407_v17  ;;  %479 = vst [vmem:[%s1136_s4 + $0x20] sm:$0xff] %v352_v18 }
 0x1c1   :  { %v411_v21 = vpop.f32.mrf.mxu1  ;;  %v356_v22 = vpop.f32.mrf.mxu0 }
 0x1c2   :  { %v412_v23 = vadd.f32 %v1014_v54, %v411_v21  ;;  %v357_v24 = vadd.f32 %v1014_v54, %v356_v22 }
 0x1c3   :  { %v685_v25 = vpop.f32.mrf.mxu1  ;;  %v652_v26 = vpop.f32.mrf.mxu0 }
 0x1c4   :  { %491 = vst [vmem:[%s1136_s4 + $0x80] sm:$0xff] %v412_v23  ;;  %480 = vst [vmem:[%s1136_s4 + $0x28] sm:$0xff] %v357_v24 }
 0x1c5   :  { %v416_v27 = vpop.f32.mrf.mxu1  ;;  %v361_v28 = vpop.f32.mrf.mxu0 }
 0x1c6   :  { %v417_v29 = vadd.f32 %v1014_v54, %v416_v27  ;;  %v362_v30 = vadd.f32 %v1014_v54, %v361_v28 }
 0x1c7   :  { %v688_v31 = vpop.f32.mrf.mxu1  ;;  %v655_v32 = vpop.f32.mrf.mxu0 }
 0x1c8   :  { %492 = vst [vmem:[%s1136_s4 + $0x88] sm:$0xff] %v417_v29  ;;  %481 = vst [vmem:[%s1136_s4 + $0x30] sm:$0xff] %v362_v30 }
 0x1c9   :  { %v421_v33 = vpop.f32.mrf.mxu1  ;;  %v366_v34 = vpop.f32.mrf.mxu0 }
 0x1ca   :  { %v422_v35 = vadd.f32 %v1014_v54, %v421_v33  ;;  %v367_v36 = vadd.f32 %v1014_v54, %v366_v34 }
 0x1cb   :  { %v691_v37 = vpop.f32.mrf.mxu1  ;;  %v658_v38 = vpop.f32.mrf.mxu0 }
 0x1cc   :  { %493 = vst [vmem:[%s1136_s4 + $0x90] sm:$0xff] %v422_v35  ;;  %482 = vst [vmem:[%s1136_s4 + $0x38] sm:$0xff] %v367_v36 }
 0x1cd   :  { %v426_v39 = vpop.f32.mrf.mxu1  ;;  %v371_v40 = vpop.f32.mrf.mxu0 }
 0x1ce   :  { %v427_v41 = vadd.f32 %v1014_v54, %v426_v39  ;;  %v372_v42 = vadd.f32 %v1014_v54, %v371_v40 }
 0x1cf   :  { %v694_v43 = vpop.f32.mrf.mxu1  ;;  %v661_v44 = vpop.f32.mrf.mxu0 }
 0x1d0   :  { %494 = vst [vmem:[%s1136_s4 + $0x98] sm:$0xff] %v427_v41  ;;  %483 = vst [vmem:[%s1136_s4 + $0x40] sm:$0xff] %v372_v42 }
 0x1d1   :  { %v431_v45 = vpop.f32.mrf.mxu1  ;;  %v376_v46 = vpop.f32.mrf.mxu0 }
 0x1d2   :  { %v432_v47 = vadd.f32 %v1014_v54, %v431_v45  ;;  %v377_v48 = vadd.f32 %v1014_v54, %v376_v46 }
 0x1d3   :  { %v697_v49 = vpop.f32.mrf.mxu1  ;;  %v664_v50 = vpop.f32.mrf.mxu0 }
 0x1d4   :  { %495 = vst [vmem:[%s1136_s4 + $0xa0] sm:$0xff] %v432_v47  ;;  %484 = vst [vmem:[%s1136_s4 + $0x48] sm:$0xff] %v377_v48 }
 0x1d5   :  { %v436_v51 = vpop.f32.mrf.mxu1  ;;  %v381_v52 = vpop.f32.mrf.mxu0 }
 0x1d6   :  { %v437_v53 = vadd.f32 %v1014_v54, %v436_v51  ;;  %v382_v55 = vadd.f32 %v1014_v54, %v381_v52 }
 0x1d7   :  { %v700_v56 = vpop.f32.mrf.mxu1  ;;  %v667_v57 = vpop.f32.mrf.mxu0 }
 0x1d8   :  { %496 = vst [vmem:[%s1136_s4 + $0xa8] sm:$0xff] %v437_v53  ;;  %485 = vst [vmem:[%s1136_s4 + $0x50] sm:$0xff] %v382_v55 }
 0x1d9   :  { %v441_v58 = vpop.f32.mrf.mxu1 }
 0x1da   :  { %v442_v59 = vadd.f32 %v1014_v54, %v441_v58 }
 0x1db   :  { %v703_v60 = vpop.f32.mrf.mxu1 }
 0x1dc   :  { %497 = vst [vmem:[%s1136_s4 + $0xb0] sm:$0xff] %v442_v59 }
 0x1dd   :  { %v446_v61 = vpop.f32.mrf.mxu1 }
 0x1de   :  { %v447_v62 = vadd.f32 %v1014_v54, %v446_v61 }
 0x1df   :  { %v706_v63 = vpop.f32.mrf.mxu1 }
 0x1e0   :  { %498 = vst [vmem:[%s1136_s4 + $0xb8] sm:$0xff] %v447_v62 }
 0x1e1   :  { %v451_v0 = vpop.f32.mrf.mxu1 }
 0x1e2   :  { %v452_v1 = vadd.f32 %v1014_v54, %v451_v0 }
 0x1e3   :  { %v709_v2 = vpop.f32.mrf.mxu1 }
 0x1e4   :  { %499 = vst [vmem:[%s1136_s4 + $0xc0] sm:$0xff] %v452_v1 }
 0x1e5   :  { %v456_v3 = vpop.f32.mrf.mxu1 }
 0x1e6   :  { %v457_v4 = vadd.f32 %v1014_v54, %v456_v3 }
 0x1e7   :  { %v712_v5 = vpop.f32.mrf.mxu1 }
 0x1e8   :  { %500 = vst [vmem:[%s1136_s4 + $0xc8] sm:$0xff] %v457_v4 }
 0x1e9   :  { %v461_v6 = vpop.f32.mrf.mxu1 }
 0x1ea   :  { %v462_v7 = vadd.f32 %v1014_v54, %v461_v6 }
 0x1eb   :  { %v715_v8 = vpop.f32.mrf.mxu1 }
 0x1ec   :  { %501 = vst [vmem:[%s1136_s4 + $0xd0] sm:$0xff] %v462_v7 }
 0x1ed   :  { %v466_v9 = vpop.f32.mrf.mxu1 }
 0x1ee   :  { %v467_v10 = vadd.f32 %v1014_v54, %v466_v9 }
 0x1ef   :  { %v718_v11 = vpop.f32.mrf.mxu1 }
 0x1f0   :  { %502 = vst [vmem:[%s1136_s4 + $0xd8] sm:$0xff] %v467_v10 }
 0x1f1   :  { %v471_v12 = vpop.f32.mrf.mxu1 }
 0x1f2   :  { %v472_v13 = vadd.f32 %v1014_v54, %v471_v12 }
 0x1f3   :  { %v721_v14 = vpop.f32.mrf.mxu1 }
 0x1f4   :  { %503 = vst [vmem:[%s1136_s4 + $0xe0] sm:$0xff] %v472_v13 }

</bundles_post_ra>
